<compile_context>
chip_gen: v6e
topology: v6e:2x2x1
jax: 0.10.0
libtpu: 0.0.40
codegen_flags: <defaults>
</compile_context>

<pallas_src>
import jax
import jax.numpy as jnp
from jax.experimental import pallas as pl
from jax.experimental.pallas import tpu as pltpu

LN_EPS = 1e-12


def _vmem_budget_bytes():
    """Scoped-VMEM budget per grid step.  Query the chip when possible and
    budget against half of physical VMEM; fall back to the most restrictive
    generation (v7x: 64 MiB physical / 32 MiB scoped default).  v5e/v6e
    (128 MiB physical) are capped at 48 MiB so the raised vmem_limit_bytes
    stays conservative."""
    cap = 64 * 1024 * 1024
    try:
        cap = int(pltpu.get_tpu_info().vmem_capacity_bytes)
    except Exception:
        pass
    return min(cap // 2, 48 * 1024 * 1024)


def _pick_tb(batch, seq, hidden, k_tokens, *, vmem_budget):
    """Pick the batch tile TB (divides B).

    Generation notes (from the review):
      * v5e/v6e: single TensorCore — do not force >=2 grid steps; grow TB so
        the MXU M dim (TB*S rows) is filled and the ~0.35us/step overhead is
        amortized.
      * v7x: 2 TensorCores but only 64 MiB VMEM — prefer >=2 grid steps when
        that does not shrink the MXU M fill, and cap TB by the VMEM budget.
    """
    kh = k_tokens * hidden
    resident = 2 * (kh + hidden) * hidden * 4              # fused W (2 buffers, f32 bound)
    per_b = 4 * (2 * seq * hidden                          # x block, double buffered
                 + 2 * (seq + k_tokens) * hidden           # out block, double buffered
                 + 3 * seq * (kh + hidden))                # y / score / e / value_t temps
    divisors = [d for d in range(1, batch + 1) if batch % d == 0]
    fits = [d for d in divisors if resident + d * per_b <= vmem_budget] or [1]
    full = [d for d in fits if d * seq >= 512]             # fills 2x256 MXU M dim
    tb = min(full) if full else max(fits)
    if batch // tb < 2:
        multi = [d for d in fits if batch // d >= 2]
        if multi:
            cand = max(multi)
            if cand * seq >= 512 or cand * seq >= max(fits) * seq // 2:
                tb = cand
    return tb


def _make_kernel(tb, seq, num_elementwise, hidden, eps, mm_dtype, exp_dtype,
                 approx_recip):
    TB, S, K, H = tb, seq, num_elementwise, hidden
    KH = K * H

    def kernel(x_ref, mask_ref, w_ref, bval_ref, gamma_ref, beta_ref, out_ref):
        x = x_ref[...]                                   # [TB, S, H] f32

        # Pass the input straight through to rows [0, S) of the output
        # (avoids an HBM-heavy wrapper-level concat).
        out_ref[:, :S, :] = x

        # Fused score/value projection: one MXU launch with M = TB*S rows.
        x2 = x.reshape(TB * S, H)
        if mm_dtype != jnp.float32:
            x2 = x2.astype(mm_dtype)                     # bf16 MXU inputs
        y = jnp.dot(x2, w_ref[...], preferred_element_type=jnp.float32)
        y = y.reshape(TB, S, KH + H)                     # leading-dim split: free

        # b_score dropped: softmax over S is shift-invariant per (k, h).
        score = y[:, :, :KH] + mask_ref[...]             # [TB, S, KH]  (lane slice)
        value = y[:, :, KH:]                             # [TB, S, H]   (lane slice)

        # Numerically stable softmax over the sequence axis; normalization is
        # deferred to the pooled [TB, KH] result (one reciprocal, not S*KH divides).
        m = jnp.max(score, axis=1, keepdims=True)        # [TB, 1, KH]
        d = score - m
        if exp_dtype != jnp.float32:
            # Optional bf16 exp (v6e/v7x EUP has bf16; keep f32 on v5e).
            e = jnp.exp(d.astype(exp_dtype)).astype(jnp.float32)
        else:
            e = jnp.exp(d)                               # [TB, S, KH]
        denom = jnp.sum(e, axis=1)                       # [TB, KH]

        # Vectorized pooling over all K global tokens at once: replicate the
        # value slab along lanes (pure vreg copies when H % 128 == 0) instead
        # of relayouting the big `e` tensor to [TB, S, K, H].
        value_t = jnp.tile(value, (1, 1, K))             # [TB, S, KH]
        pooled = jnp.sum(e * value_t, axis=1)            # [TB, KH]
        if approx_recip:
            pooled = pooled * pl.reciprocal(denom, approx=True)   # EUP slot
        else:
            pooled = pooled / denom

        # Stack the K tokens (lane-aligned slices of a tiny array) and apply
        # the deferred value bias: sum_s attn == 1 per (k,h), so "+ b_value"
        # after pooling is exact.
        pooled3 = jnp.concatenate(
            [pooled[:, None, k * H:(k + 1) * H] for k in range(K)], axis=1)
        pooled3 = pooled3 + bval_ref[...]                # [TB, K, H]

        # One BertLayerNorm over the stacked tokens + one dense slab store
        # (replaces K masked single-row stores).
        mu = jnp.mean(pooled3, axis=-1, keepdims=True)
        var = jnp.mean(jnp.square(pooled3 - mu), axis=-1, keepdims=True)
        normed = ((pooled3 - mu) * jax.lax.rsqrt(var + eps)
                  * gamma_ref[...] + beta_ref[...])      # [TB, K, H]
        out_ref[:, S:, :] = normed

    return kernel


def append_elementwise_attention(hidden_states, attention_mask, params, *,
                                 tb=None, matmul_dtype=jnp.bfloat16,
                                 exp_dtype=jnp.float32):
    """hidden_states [B,S,H] f32, attention_mask [B,S] additive f32.
    Returns [B, S+K, H] = concat(hidden_states, LayerNorm(global_tokens))."""
    B, S, H = hidden_states.shape
    KH = params["w_score"].shape[1]
    K = KH // H
    budget = _vmem_budget_bytes()
    if tb is None:
        tb = _pick_tb(B, S, H, K, vmem_budget=(budget * 3) // 4)
    assert B % tb == 0, (B, tb)

    mask3 = attention_mask.reshape(B, S, 1).astype(jnp.float32)
    # Fused score+value weight, cast wrapper-side so only one matmul-precision
    # copy lives in VMEM (bf16 halves resident weight bytes & HBM reads).
    w_fused = jnp.concatenate(
        [params["w_score"], params["w_value"]], axis=1).astype(matmul_dtype)
    bval = params["b_value"].reshape(1, 1, H).astype(jnp.float32)
    gamma = params["ln_gamma"].reshape(1, 1, H).astype(jnp.float32)
    beta = params["ln_beta"].reshape(1, 1, H).astype(jnp.float32)

    kernel = _make_kernel(tb, S, K, H, LN_EPS, matmul_dtype, exp_dtype,
                          approx_recip=(matmul_dtype != jnp.float32))

    return pl.pallas_call(
        kernel,
        out_shape=jax.ShapeDtypeStruct((B, S + K, H), jnp.float32),
        grid=(B // tb,),
        in_specs=[
            pl.BlockSpec((tb, S, H), lambda b: (b, 0, 0)),       # hidden_states
            pl.BlockSpec((tb, S, 1), lambda b: (b, 0, 0)),       # additive mask
            pl.BlockSpec((H, KH + H), lambda b: (0, 0)),         # fused W (resident)
            pl.BlockSpec((1, 1, H), lambda b: (0, 0, 0)),        # b_value
            pl.BlockSpec((1, 1, H), lambda b: (0, 0, 0)),        # ln gamma
            pl.BlockSpec((1, 1, H), lambda b: (0, 0, 0)),        # ln beta
        ],
        out_specs=pl.BlockSpec((tb, S + K, H), lambda b: (b, 0, 0)),
        compiler_params=pltpu.CompilerParams(
            dimension_semantics=("parallel",),
            vmem_limit_bytes=int(budget)),
    )(hidden_states.astype(jnp.float32), mask3, w_fused, bval, gamma, beta)


def reference(hidden_states, attention_mask, params):
    """Pure-JAX reference of the same forward pass (full f32, b_score kept)."""
    B, S, H = hidden_states.shape
    KH = params["w_score"].shape[1]
    K = KH // H
    score = hidden_states @ params["w_score"] + params["b_score"]       # [B,S,KH]
    score = score + attention_mask[:, :, None]
    attn = jax.nn.softmax(score, axis=1)                                # over S
    value = hidden_states @ params["w_value"] + params["b_value"]       # [B,S,H]
    attn4 = attn.reshape(B, S, K, H)
    pooled = jnp.einsum("bskh,bsh->bkh", attn4, value)                  # [B,K,H]
    mu = jnp.mean(pooled, axis=-1, keepdims=True)
    var = jnp.mean(jnp.square(pooled - mu), axis=-1, keepdims=True)
    normed = (pooled - mu) / jnp.sqrt(var + LN_EPS)
    normed = normed * params["ln_gamma"] + params["ln_beta"]
    return jnp.concatenate([hidden_states, normed], axis=1)


def init_params(key, hidden, num_elementwise):
    k1, k2, k3, k4 = jax.random.split(key, 4)
    scale = 0.02
    return {
        "w_score": scale * jax.random.normal(
            k1, (hidden, num_elementwise * hidden), jnp.float32),
        "b_score": scale * jax.random.normal(
            k2, (num_elementwise * hidden,), jnp.float32),
        "w_value": scale * jax.random.normal(k3, (hidden, hidden), jnp.float32),
        "b_value": scale * jax.random.normal(k4, (hidden,), jnp.float32),
        "ln_gamma": jnp.ones((hidden,), jnp.float32),
        "ln_beta": jnp.zeros((hidden,), jnp.float32),
    }


if __name__ == "__main__":
    B, S, H, K = 4, 16, 128, 4
    key = jax.random.PRNGKey(0)
    k_x, k_p = jax.random.split(key)

    hidden_states = jax.random.normal(k_x, (B, S, H), jnp.float32)
    # additive mask: keep everything in batch 0, mask the last 4 tokens of batch 1
    keep = jnp.ones((B, S), jnp.float32).at[1, -4:].set(0.0)
    attention_mask = (1.0 - keep) * -10000.0

    params = init_params(k_p, H, K)
    ref = reference(hidden_states, attention_mask, params)

    # Strict check: f32 matmul mode must match the pure-JAX reference at 1e-3
    # (also validates dropping b_score / deferring b_value, which are exact).
    out_f32 = append_elementwise_attention(
        hidden_states, attention_mask, params, matmul_dtype=jnp.float32)
    out_f32 = jax.block_until_ready(out_f32)
    assert out_f32.shape == (B, S + K, H)
    assert jnp.allclose(out_f32, ref, atol=1e-3, rtol=1e-3), "f32 mismatch vs reference"

    # Default perf mode: bf16 MXU inputs with f32 accumulation; checked at a
    # bf16-appropriate tolerance (LayerNorm amplifies bf16 rounding slightly).
    out = append_elementwise_attention(hidden_states, attention_mask, params)
    out = jax.block_until_ready(out)
    assert out.shape == (B, S + K, H)
    assert jnp.allclose(out, ref, atol=3e-2, rtol=3e-2), "bf16 mismatch vs reference"

    print("KERNEL_OK")
</pallas_src>

<mosaic_0001>
module attributes {stable_mosaic.version = 11 : i64} {
  func.func @kernel(%arg0: i32, %arg1: memref<2x16x128xf32, #tpu.memory_space<vmem>>, %arg2: memref<2x16x1xf32, #tpu.memory_space<vmem>>, %arg3: memref<128x640xf32, #tpu.memory_space<vmem>>, %arg4: memref<1x1x128xf32, #tpu.memory_space<vmem>>, %arg5: memref<1x1x128xf32, #tpu.memory_space<vmem>>, %arg6: memref<1x1x128xf32, #tpu.memory_space<vmem>>, %arg7: memref<2x20x128xf32, #tpu.memory_space<vmem>>) attributes {dimension_semantics = [#tpu.dimension_semantics<parallel>], iteration_bounds = array<i64: 2>, scalar_prefetch = 0 : i64, scratch_operands = 0 : i64, tpu.core_type = #tpu.core_type<tc>, window_params = [{transform_indices = @transform_0, window_bounds = array<i64: 2, 16, 128>}, {transform_indices = @transform_1, window_bounds = array<i64: 2, 16, 1>}, {pipeline_mode = #tpu.pipeline_mode<synchronous>, transform_indices = @transform_2, window_bounds = array<i64: 128, 640>}, {pipeline_mode = #tpu.pipeline_mode<synchronous>, transform_indices = @transform_3, window_bounds = array<i64: 1, 1, 128>}, {pipeline_mode = #tpu.pipeline_mode<synchronous>, transform_indices = @transform_4, window_bounds = array<i64: 1, 1, 128>}, {pipeline_mode = #tpu.pipeline_mode<synchronous>, transform_indices = @transform_5, window_bounds = array<i64: 1, 1, 128>}, {transform_indices = @transform_6, window_bounds = array<i64: 2, 20, 128>}]} {
    %c0 = arith.constant 0 : index
    %c0_0 = arith.constant 0 : index
    %c0_1 = arith.constant 0 : index
    %0 = vector.load %arg1[%c0, %c0_0, %c0_1] : memref<2x16x128xf32, #tpu.memory_space<vmem>>, vector<2x16x128xf32>
    %c0_2 = arith.constant 0 : index
    %c0_3 = arith.constant 0 : index
    %c0_4 = arith.constant 0 : index
    %1 = vector.load %arg7[%c0_2, %c0_3, %c0_4] : memref<2x20x128xf32, #tpu.memory_space<vmem>>, vector<2x16x128xf32>
    tpu.vector_store %arg7[%c0_2, %c0_3, %c0_4], %0 {strides = array<i32>} : memref<2x20x128xf32, #tpu.memory_space<vmem>>, vector<2x16x128xf32>,
    %2 = vector.shape_cast %0 : vector<2x16x128xf32> to vector<32x128xf32>
    %c0_5 = arith.constant 0 : index
    %c0_6 = arith.constant 0 : index
    %3 = vector.load %arg3[%c0_5, %c0_6] : memref<128x640xf32, #tpu.memory_space<vmem>>, vector<128x640xf32>
    %cst = arith.constant dense<0.000000e+00> : vector<32x640xf32>
    %4 = tpu.matmul %2, %3, %cst {dimension_numbers = #tpu.dot_dimension_numbers<[1], [0], [0], [1], [0, 0, 1, 1], [], []>} : vector<32x128xf32>, vector<128x640xf32>, vector<32x640xf32> -> vector<32x640xf32>
    %5 = vector.shape_cast %4 : vector<32x640xf32> to vector<2x16x640xf32>
    %6 = vector.extract_strided_slice %5 {offsets = [0, 0, 0], sizes = [2, 16, 512], strides = [1, 1, 1]} : vector<2x16x640xf32> to vector<2x16x512xf32>
    %c0_7 = arith.constant 0 : index
    %c0_8 = arith.constant 0 : index
    %c0_9 = arith.constant 0 : index
    %7 = vector.load %arg2[%c0_7, %c0_8, %c0_9] : memref<2x16x1xf32, #tpu.memory_space<vmem>>, vector<2x16x1xf32>
    %8 = vector.broadcast %7 : vector<2x16x1xf32> to vector<2x16x512xf32>
    %9 = arith.addf %6, %8 : vector<2x16x512xf32>
    %10 = vector.extract_strided_slice %5 {offsets = [0, 0, 512], sizes = [2, 16, 128], strides = [1, 1, 1]} : vector<2x16x640xf32> to vector<2x16x128xf32>
    %cst_10 = arith.constant dense<0xFF800000> : vector<2x512xf32>
    %11 = vector.multi_reduction <maximumf>, %9, %cst_10 [1] : vector<2x16x512xf32> to vector<2x512xf32>
    %12 = vector.shape_cast %11 : vector<2x512xf32> to vector<2x1x512xf32>
    %13 = vector.broadcast %12 : vector<2x1x512xf32> to vector<2x16x512xf32>
    %14 = arith.subf %9, %13 : vector<2x16x512xf32>
    %15 = math.exp %14 : vector<2x16x512xf32>
    %cst_11 = arith.constant dense<0.000000e+00> : vector<2x512xf32>
    %16 = vector.multi_reduction <add>, %15, %cst_11 [1] : vector<2x16x512xf32> to vector<2x512xf32>
    %17 = tpu.concatenate %10, %10, %10, %10 in 2 : vector<2x16x128xf32>, vector<2x16x128xf32>, vector<2x16x128xf32>, vector<2x16x128xf32> -> vector<2x16x512xf32>
    %18 = arith.mulf %15, %17 : vector<2x16x512xf32>
    %cst_12 = arith.constant dense<0.000000e+00> : vector<2x512xf32>
    %19 = vector.multi_reduction <add>, %18, %cst_12 [1] : vector<2x16x512xf32> to vector<2x512xf32>
    %20 = arith.divf %19, %16 : vector<2x512xf32>
    %21 = vector.extract_strided_slice %20 {offsets = [0, 0], sizes = [2, 128], strides = [1, 1]} : vector<2x512xf32> to vector<2x128xf32>
    %22 = vector.shape_cast %21 : vector<2x128xf32> to vector<2x1x128xf32>
    %23 = vector.extract_strided_slice %20 {offsets = [0, 128], sizes = [2, 128], strides = [1, 1]} : vector<2x512xf32> to vector<2x128xf32>
    %24 = vector.shape_cast %23 : vector<2x128xf32> to vector<2x1x128xf32>
    %25 = vector.extract_strided_slice %20 {offsets = [0, 256], sizes = [2, 128], strides = [1, 1]} : vector<2x512xf32> to vector<2x128xf32>
    %26 = vector.shape_cast %25 : vector<2x128xf32> to vector<2x1x128xf32>
    %27 = vector.extract_strided_slice %20 {offsets = [0, 384], sizes = [2, 128], strides = [1, 1]} : vector<2x512xf32> to vector<2x128xf32>
    %28 = vector.shape_cast %27 : vector<2x128xf32> to vector<2x1x128xf32>
    %29 = tpu.concatenate %22, %24, %26, %28 in 1 : vector<2x1x128xf32>, vector<2x1x128xf32>, vector<2x1x128xf32>, vector<2x1x128xf32> -> vector<2x4x128xf32>
    %c0_13 = arith.constant 0 : index
    %c0_14 = arith.constant 0 : index
    %c0_15 = arith.constant 0 : index
    %30 = vector.load %arg4[%c0_13, %c0_14, %c0_15] : memref<1x1x128xf32, #tpu.memory_space<vmem>>, vector<1x1x128xf32>
    %31 = vector.broadcast %30 : vector<1x1x128xf32> to vector<2x4x128xf32>
    %32 = arith.addf %29, %31 : vector<2x4x128xf32>
    %cst_16 = arith.constant dense<0.000000e+00> : vector<2x4xf32>
    %33 = vector.multi_reduction <add>, %32, %cst_16 [2] : vector<2x4x128xf32> to vector<2x4xf32>
    %34 = vector.shape_cast %33 : vector<2x4xf32> to vector<2x4x1xf32>
    %cst_17 = arith.constant 1.280000e+02 : f32
    %35 = vector.broadcast %cst_17 : f32 to vector<2x4x1xf32>
    %36 = arith.divf %34, %35 : vector<2x4x1xf32>
    %37 = vector.broadcast %36 : vector<2x4x1xf32> to vector<2x4x128xf32>
    %38 = arith.subf %32, %37 : vector<2x4x128xf32>
    %39 = arith.mulf %38, %38 : vector<2x4x128xf32>
    %cst_18 = arith.constant dense<0.000000e+00> : vector<2x4xf32>
    %40 = vector.multi_reduction <add>, %39, %cst_18 [2] : vector<2x4x128xf32> to vector<2x4xf32>
    %41 = vector.shape_cast %40 : vector<2x4xf32> to vector<2x4x1xf32>
    %cst_19 = arith.constant 1.280000e+02 : f32
    %42 = vector.broadcast %cst_19 : f32 to vector<2x4x1xf32>
    %43 = arith.divf %41, %42 : vector<2x4x1xf32>
    %44 = vector.broadcast %36 : vector<2x4x1xf32> to vector<2x4x128xf32>
    %45 = arith.subf %32, %44 : vector<2x4x128xf32>
    %cst_20 = arith.constant 9.99999996E-13 : f32
    %46 = vector.broadcast %cst_20 : f32 to vector<2x4x1xf32>
    %47 = arith.addf %43, %46 : vector<2x4x1xf32>
    %48 = math.rsqrt %47 : vector<2x4x1xf32>
    %49 = vector.broadcast %48 : vector<2x4x1xf32> to vector<2x4x128xf32>
    %50 = arith.mulf %45, %49 : vector<2x4x128xf32>
    %c0_21 = arith.constant 0 : index
    %c0_22 = arith.constant 0 : index
    %c0_23 = arith.constant 0 : index
    %51 = vector.load %arg5[%c0_21, %c0_22, %c0_23] : memref<1x1x128xf32, #tpu.memory_space<vmem>>, vector<1x1x128xf32>
    %52 = vector.broadcast %51 : vector<1x1x128xf32> to vector<2x4x128xf32>
    %53 = arith.mulf %50, %52 : vector<2x4x128xf32>
    %c0_24 = arith.constant 0 : index
    %c0_25 = arith.constant 0 : index
    %c0_26 = arith.constant 0 : index
    %54 = vector.load %arg6[%c0_24, %c0_25, %c0_26] : memref<1x1x128xf32, #tpu.memory_space<vmem>>, vector<1x1x128xf32>
    %55 = vector.broadcast %54 : vector<1x1x128xf32> to vector<2x4x128xf32>
    %56 = arith.addf %53, %55 : vector<2x4x128xf32>
    %c0_27 = arith.constant 0 : index
    %c16 = arith.constant 16 : index
    %c0_28 = arith.constant 0 : index
    %57 = vector.load %arg7[%c0_27, %c16, %c0_28] : memref<2x20x128xf32, #tpu.memory_space<vmem>>, vector<2x4x128xf32>
    tpu.vector_store %arg7[%c0_27, %c16, %c0_28], %56 {strides = array<i32>} : memref<2x20x128xf32, #tpu.memory_space<vmem>>, vector<2x4x128xf32>,
    return
  }
  func.func @transform_0(%arg0: i32) -> (i32, i32, i32) {
    %c0_i32 = arith.constant 0 : i32
    %c0_i32_0 = arith.constant 0 : i32
    %c0_i32_1 = arith.constant 0 : i32
    return %arg0, %c0_i32, %c0_i32_0 : i32, i32, i32
  }
  func.func @transform_1(%arg0: i32) -> (i32, i32, i32) {
    %c0_i32 = arith.constant 0 : i32
    %c0_i32_0 = arith.constant 0 : i32
    %c0_i32_1 = arith.constant 0 : i32
    return %arg0, %c0_i32, %c0_i32_0 : i32, i32, i32
  }
  func.func @transform_2(%arg0: i32) -> (i32, i32) {
    %c0_i32 = arith.constant 0 : i32
    %c0_i32_0 = arith.constant 0 : i32
    %c0_i32_1 = arith.constant 0 : i32
    return %c0_i32, %c0_i32_0 : i32, i32
  }
  func.func @transform_3(%arg0: i32) -> (i32, i32, i32) {
    %c0_i32 = arith.constant 0 : i32
    %c0_i32_0 = arith.constant 0 : i32
    %c0_i32_1 = arith.constant 0 : i32
    %c0_i32_2 = arith.constant 0 : i32
    return %c0_i32, %c0_i32_0, %c0_i32_1 : i32, i32, i32
  }
  func.func @transform_4(%arg0: i32) -> (i32, i32, i32) {
    %c0_i32 = arith.constant 0 : i32
    %c0_i32_0 = arith.constant 0 : i32
    %c0_i32_1 = arith.constant 0 : i32
    %c0_i32_2 = arith.constant 0 : i32
    return %c0_i32, %c0_i32_0, %c0_i32_1 : i32, i32, i32
  }
  func.func @transform_5(%arg0: i32) -> (i32, i32, i32) {
    %c0_i32 = arith.constant 0 : i32
    %c0_i32_0 = arith.constant 0 : i32
    %c0_i32_1 = arith.constant 0 : i32
    %c0_i32_2 = arith.constant 0 : i32
    return %c0_i32, %c0_i32_0, %c0_i32_1 : i32, i32, i32
  }
  func.func @transform_6(%arg0: i32) -> (i32, i32, i32) {
    %c0_i32 = arith.constant 0 : i32
    %c0_i32_0 = arith.constant 0 : i32
    %c0_i32_1 = arith.constant 0 : i32
    return %arg0, %c0_i32, %c0_i32_0 : i32, i32, i32
  }
}

</mosaic_0001>

<bundles_post_ra>
// kernel: tpu_custom_call.1
= control target key start
LH: loop header
LB: loop body
LE: loop exit
PB: predicated region body
PF: predicated region fallthrough
CT: control target
= control target key end

     0   :  { %11 = vsyncpa [#allocation3], 0  ;;  %s1355_s21 = smov 0   ;;  %s1547_s0 = inlined_call_operand.vmem [shape: f32[4,16,128], index: 0, kind: input, shape index: {}]   ;;  %s1548_s1 = inlined_call_operand.vmem [shape: f32[4,16,1], index: 1, kind: input, shape index: {}]   ;;  %s1549_s2 = inlined_call_operand.hbm [shape: f32[128,640], index: 2, kind: input, shape index: {}]   ;;  %s1550_s3 = inlined_call_operand.vmem [shape: f32[1,1,128], index: 3, kind: input, shape index: {}]   ;;  %s1551_s4 = inlined_call_operand.vmem [shape: f32[1,1,128], index: 4, kind: input, shape index: {}]   ;;  %s1552_s5 = inlined_call_operand.vmem [shape: f32[1,1,128], index: 5, kind: input, shape index: {}]   ;;  %s1553_s6 = inlined_call_operand.vmem [shape: f32[4,20,128], index: 6, kind: output, shape index: {}]  }
   0x1 LB: > { %s1087_s22 = sadd.s32 4294967295, %s1313_s21   ;;  %p1089_p0 = scmp.ge.s32.totalorder %s1313_s21, 1  ;;  %s1313_s21 = sphi %s1355_s21, %s17_s21  }
   0x2   : > { %p184_p1 = scmp.lt.s32.totalorder %s1313_s21, 3  ;;  %s1315_s23 = smov [#allocation2]  }
   0x3   : > { %s196_s24 = sshll.u32 %s1315_s23, 4  ;;  %p1369_p3 = scmp.eq.s32.totalorder %s1087_s22, 0  ;;  %s197_s24 = int_to_ptr.vmem [resolvable:$true] %s196_s24 }
   0x4   : > { %p1363_p2 = pnand %p1089_p0, %p184_p1  ;;  %s1288_s27 = scalar_lea.vmem %s197_s24, 10240 }
   0x5   : > { %p1289_p7 = scmp.ne.s32.totalorder %s197_s24, %s1288_s27  ;;  %p1296_p10 = scmp.lt.s32.totalorder %s197_s24, %s197_s24 }
   0x6   : > { %p1204_p4 = pneg %p1363_p2  ;;  %p1297_p11 = scmp.lt.s32.totalorder %s1288_s27, %s1288_s27 }
   0x8   : > { %p1205_p5 = pnand %p1369_p3, %p1204_p4  ;;  %p1298_p12 = por %p1297_p11, %p1296_p10 }
   0xa   : > { %p1279_p6 = pneg %p1205_p5 }
   0xc   : > { %p1291_p8 = pnand %p1289_p7, %p1279_p6 }
   0xe   : > { %p1292_p9 = pneg %p1291_p8 }
  0x10   : > { %p1299_p13 = pnand %p1298_p12, %p1292_p9 }
  0x12   : > { %1302 = shalt.err (!%p1299_p13)
}
  0x13   : > { %s1316_s28 = smov 640   ;;  %s1317_s29 = smov 40  }
  0x14   : > { %1207 = dma.hbm_to_vmem [thread:$0]  (!%p1205_p5), %s1549_s2, 10240, %s197_s24, [#allocation3], %s1316_s28, %s1316_s28, %s1317_s29  }
  0x15   : > { %241 = sbr.rel (%p1363_p2) target bundleno = 656 (0x290), region = 44 }
  0x1a   : > { %1308 = dma.done.wait (%p1369_p3), [#allocation3], 10240  }
  0x1b   : > { %1310 = vsyncadd (%p1369_p3), [#allocation3], 4294957056  ;;  %v1318_v0 = vmov 0.0   ;;  %v1319_v1 = vmov 0   ;;  %v384_v2 = vld [vmem:[#allocation2 + $0x260] sm:$0xff]  ;;  %v386_v3 = vld [vmem:[#allocation2 + $0x270] sm:$0xff] }
  0x1c   : > { %452 = vmatprep.mubr.f32.mxu0 %v1318_v0  ;;  %541 = vmatprep.mubr.f32.mxu1 %v1318_v0  ;;  %v383_v4 = vld [vmem:[#allocation2 + $0x258] sm:$0xff]  ;;  %v385_v5 = vld [vmem:[#allocation2 + $0x268] sm:$0xff]  ;;  %v378_v8 = vld [vmem:[#allocation2 + $0x230] sm:$0xff]  ;;  %s1390_s8 = sshll.u32 %s1087_s22, 1  ;;  %vm939_vm0 = vcmask 1040384   ;;  %vm942_vm1 = vcmask 1041408  }
  0x1d   : > { %1223 = vset.pattern.permute.xlu0 %v1319_v1  ;;  %1224 = vset.pattern.permute.xlu1 %v1319_v1  ;;  %v379_v6 = vld [vmem:[#allocation2 + $0x238] sm:$0xff]  ;;  %v381_v7 = vld [vmem:[#allocation2 + $0x248] sm:$0xff]  ;;  %v380_v9 = vld [vmem:[#allocation2 + $0x240] sm:$0xff]  ;;  %p280_p0 = scmp.lt.s32.totalorder %s1390_s8, 3  ;;  %vm945_vm2 = vcmask 1042432   ;;  %vm957_vm3 = vcmask 1043456  }
  0x1e   : > { %388 = vmatprep.subr.mxu0 %v384_v2  ;;  %477 = vmatprep.subr.mxu1 %v386_v3  ;;  %v374_v10 = vld [vmem:[#allocation2 + $0x210] sm:$0xff]  ;;  %v376_v11 = vld [vmem:[#allocation2 + $0x220] sm:$0xff]  ;;  %v373_v12 = vld [vmem:[#allocation2 + $0x208] sm:$0xff] }
  0x1f   : > { %389 = vmatpush1.msra.mxu0 %v383_v4  ;;  %478 = vmatpush1.msra.mxu1 %v385_v5  ;;  %v375_v13 = vld [vmem:[#allocation2 + $0x218] sm:$0xff]  ;;  %v369_v14 = vld [vmem:[#allocation2 + $0x1e8] sm:$0xff]  ;;  %v368_v16 = vld [vmem:[#allocation2 + $0x1e0] sm:$0xff]  ;;  %s1557_s8 = smov (!%p280_p0, %s1390_s8), 3 }
  0x20   : > { %390 = vmatprep.subr.mxu0 %v379_v6  ;;  %479 = vmatprep.subr.mxu1 %v381_v7  ;;  %v371_v15 = vld [vmem:[#allocation2 + $0x1f8] sm:$0xff]  ;;  %v370_v17 = vld [vmem:[#allocation2 + $0x1f0] sm:$0xff]  ;;  %v364_v18 = vld [vmem:[#allocation2 + $0x1c0] sm:$0xff]  ;;  %s1107_s9 = sshll.u32 %s1557_s8, 4  ;;  %s1199_s10 = smul.u32 24, %s1557_s8 }
  0x21   : > { %391 = vmatpush1.msra.mxu0 %v378_v8  ;;  %480 = vmatpush1.msra.mxu1 %v380_v9  ;;  %v366_v19 = vld [vmem:[#allocation2 + $0x1d0] sm:$0xff]  ;;  %v363_v20 = vld [vmem:[#allocation2 + $0x1b8] sm:$0xff]  ;;  %v365_v21 = vld [vmem:[#allocation2 + $0x1c8] sm:$0xff]  ;;  %s284_s13 = scalar_lea.vmem %s1547_s0, %s1107_s9  ;;  %s291_s19 = scalar_lea.vmem %s1548_s1, %s1107_s9 }
  0x22   : > { %392 = vmatprep.subr.mxu0 %v374_v10  ;;  %481 = vmatprep.subr.mxu1 %v376_v11  ;;  %v359_v22 = vld [vmem:[#allocation2 + $0x198] sm:$0xff]  ;;  %v361_v23 = vld [vmem:[#allocation2 + $0x1a8] sm:$0xff]  ;;  %v358_v24 = vld [vmem:[#allocation2 + $0x190] sm:$0xff]  ;;  %s1408_s16 = scalar_lea.vmem %s1553_s6, %s1199_s10 }
  0x23   : > { %393 = vmatpush1.msra.mxu0 %v373_v12  ;;  %482 = vmatpush1.msra.mxu1 %v375_v13  ;;  %v360_v25 = vld [vmem:[#allocation2 + $0x1a0] sm:$0xff]  ;;  %v354_v26 = vld [vmem:[#allocation2 + $0x170] sm:$0xff]  ;;  %v353_v28 = vld [vmem:[#allocation2 + $0x168] sm:$0xff] }
  0x24   : > { %394 = vmatprep.subr.mxu0 %v369_v14  ;;  %483 = vmatprep.subr.mxu1 %v371_v15  ;;  %v356_v27 = vld [vmem:[#allocation2 + $0x180] sm:$0xff]  ;;  %v355_v29 = vld [vmem:[#allocation2 + $0x178] sm:$0xff]  ;;  %v349_v30 = vld [vmem:[#allocation2 + $0x148] sm:$0xff] }
  0x25   : > { %395 = vmatpush1.msra.mxu0 %v368_v16  ;;  %484 = vmatpush1.msra.mxu1 %v370_v17  ;;  %v351_v31 = vld [vmem:[#allocation2 + $0x158] sm:$0xff]  ;;  %v348_v32 = vld [vmem:[#allocation2 + $0x140] sm:$0xff]  ;;  %v350_v33 = vld [vmem:[#allocation2 + $0x150] sm:$0xff] }
  0x26   : > { %396 = vmatprep.subr.mxu0 %v364_v18  ;;  %485 = vmatprep.subr.mxu1 %v366_v19  ;;  %v344_v34 = vld [vmem:[#allocation2 + $0x120] sm:$0xff]  ;;  %v346_v35 = vld [vmem:[#allocation2 + $0x130] sm:$0xff]  ;;  %v343_v36 = vld [vmem:[#allocation2 + $0x118] sm:$0xff] }
  0x27   : > { %397 = vmatpush1.msra.mxu0 %v363_v20  ;;  %486 = vmatpush1.msra.mxu1 %v365_v21  ;;  %v345_v37 = vld [vmem:[#allocation2 + $0x128] sm:$0xff]  ;;  %v339_v38 = vld [vmem:[#allocation2 + $0xf8] sm:$0xff]  ;;  %v338_v40 = vld [vmem:[#allocation2 + $0xf0] sm:$0xff] }
  0x28   : > { %398 = vmatprep.subr.mxu0 %v359_v22  ;;  %487 = vmatprep.subr.mxu1 %v361_v23  ;;  %v341_v39 = vld [vmem:[#allocation2 + $0x108] sm:$0xff]  ;;  %v340_v41 = vld [vmem:[#allocation2 + $0x100] sm:$0xff]  ;;  %v334_v42 = vld [vmem:[#allocation2 + $0xd0] sm:$0xff] }
  0x29   : > { %399 = vmatpush1.msra.mxu0 %v358_v24  ;;  %488 = vmatpush1.msra.mxu1 %v360_v25  ;;  %v336_v43 = vld [vmem:[#allocation2 + $0xe0] sm:$0xff]  ;;  %v333_v44 = vld [vmem:[#allocation2 + $0xc8] sm:$0xff]  ;;  %v335_v45 = vld [vmem:[#allocation2 + $0xd8] sm:$0xff] }
  0x2a   : > { %400 = vmatprep.subr.mxu0 %v354_v26  ;;  %489 = vmatprep.subr.mxu1 %v356_v27  ;;  %v329_v46 = vld [vmem:[#allocation2 + $0xa8] sm:$0xff]  ;;  %v331_v47 = vld [vmem:[#allocation2 + $0xb8] sm:$0xff]  ;;  %v328_v48 = vld [vmem:[#allocation2 + $0xa0] sm:$0xff] }
  0x2b   : > { %401 = vmatpush1.msra.mxu0 %v353_v28  ;;  %490 = vmatpush1.msra.mxu1 %v355_v29  ;;  %v330_v49 = vld [vmem:[#allocation2 + $0xb0] sm:$0xff]  ;;  %v1410_v50 = vld [vmem:[%s284_s13] sm:$0xff]  ;;  %v1412_v51 = vld [vmem:[%s284_s13 + $0x8] sm:$0xff] }
  0x2c   : > { %402 = vmatprep.subr.mxu0 %v349_v30  ;;  %491 = vmatprep.subr.mxu1 %v351_v31  ;;  %v324_v52 = vld [vmem:[#allocation2 + $0x80] sm:$0xff]  ;;  %v326_v53 = vld [vmem:[#allocation2 + $0x90] sm:$0xff]  ;;  %304 = vst [vmem:[%s1408_s16] sm:$0xff] %v1410_v50  ;;  %305 = vst [vmem:[%s1408_s16 + $0x8] sm:$0xff] %v1412_v51 }
  0x2d   : > { %403 = vmatpush1.msra.mxu0 %v348_v32  ;;  %492 = vmatpush1.msra.mxu1 %v350_v33  ;;  %v1418_v54 = vld [vmem:[%s284_s13 + $0x10] sm:$0xff]  ;;  %v323_v55 = vld [vmem:[#allocation2 + $0x78] sm:$0xff]  ;;  %v325_v56 = vld [vmem:[#allocation2 + $0x88] sm:$0xff] }
  0x2e   : > { %404 = vmatprep.subr.mxu0 %v344_v34  ;;  %493 = vmatprep.subr.mxu1 %v346_v35  ;;  %306 = vst [vmem:[%s1408_s16 + $0x18] sm:$0xff] %v1418_v54  ;;  %v1422_v57 = vld [vmem:[%s284_s13 + $0x18] sm:$0xff]  ;;  %v321_v59 = vld [vmem:[#allocation2 + $0x68] sm:$0xff]  ;;  %v318_v60 = vld [vmem:[#allocation2 + $0x50] sm:$0xff] }
  0x2f   : > { %405 = vmatpush1.msra.mxu0 %v343_v36  ;;  %494 = vmatpush1.msra.mxu1 %v345_v37  ;;  %v319_v58 = vld [vmem:[#allocation2 + $0x58] sm:$0xff]  ;;  %307 = vst [vmem:[%s1408_s16 + $0x20] sm:$0xff] %v1422_v57  ;;  %v320_v61 = vld [vmem:[#allocation2 + $0x60] sm:$0xff]  ;;  %v314_v62 = vld [vmem:[#allocation2 + $0x30] sm:$0xff] }
  0x30   : > { %406 = vmatprep.subr.mxu0 %v339_v38  ;;  %495 = vmatprep.subr.mxu1 %v341_v39  ;;  %v316_v63 = vld [vmem:[#allocation2 + $0x40] sm:$0xff]  ;;  %v313_v1 = vld [vmem:[#allocation2 + $0x28] sm:$0xff]  ;;  %v315_v2 = vld [vmem:[#allocation2 + $0x38] sm:$0xff] }
  0x31   : > { %407 = vmatpush1.msra.mxu0 %v338_v40  ;;  %496 = vmatpush1.msra.mxu1 %v340_v41  ;;  %v309_v3 = vld [vmem:[#allocation2 + $0x8] sm:$0xff]  ;;  %v311_v4 = vld [vmem:[#allocation2 + $0x18] sm:$0xff]  ;;  %v308_v5 = vld [vmem:[#allocation2] sm:$0xff] }
  0x32   : > { %408 = vmatprep.subr.mxu0 %v334_v42  ;;  %497 = vmatprep.subr.mxu1 %v336_v43  ;;  %v310_v6 = vld [vmem:[#allocation2 + $0x10] sm:$0xff]  ;;  %v387_v7 = vld [vmem:[#allocation2 + $0x278] sm:$0xff]  ;;  %v377_v9 = vld [vmem:[#allocation2 + $0x228] sm:$0xff] }
  0x33   : > { %409 = vmatpush1.msra.mxu0 %v333_v44  ;;  %498 = vmatpush1.msra.mxu1 %v335_v45  ;;  %v382_v8 = vld [vmem:[#allocation2 + $0x250] sm:$0xff]  ;;  %v372_v10 = vld [vmem:[#allocation2 + $0x200] sm:$0xff]  ;;  %v367_v11 = vld [vmem:[#allocation2 + $0x1d8] sm:$0xff] }
  0x34   : > { %410 = vmatprep.subr.mxu0 %v329_v46  ;;  %499 = vmatprep.subr.mxu1 %v331_v47  ;;  %v362_v12 = vld [vmem:[#allocation2 + $0x1b0] sm:$0xff]  ;;  %v357_v13 = vld [vmem:[#allocation2 + $0x188] sm:$0xff]  ;;  %v352_v14 = vld [vmem:[#allocation2 + $0x160] sm:$0xff] }
  0x35   : > { %411 = vmatpush1.msra.mxu0 %v328_v48  ;;  %500 = vmatpush1.msra.mxu1 %v330_v49  ;;  %v342_v15 = vld [vmem:[#allocation2 + $0x110] sm:$0xff]  ;;  %v337_v16 = vld [vmem:[#allocation2 + $0xe8] sm:$0xff]  ;;  %v332_v17 = vld [vmem:[#allocation2 + $0xc0] sm:$0xff] }
  0x36   : > { %412 = vmatprep.subr.mxu0 %v324_v52  ;;  %501 = vmatprep.subr.mxu1 %v326_v53  ;;  %v327_v18 = vld [vmem:[#allocation2 + $0x98] sm:$0xff]  ;;  %v322_v19 = vld [vmem:[#allocation2 + $0x70] sm:$0xff]  ;;  %v317_v20 = vld [vmem:[#allocation2 + $0x48] sm:$0xff] }
  0x37   : > { %413 = vmatpush1.msra.mxu0 %v323_v55  ;;  %502 = vmatpush1.msra.mxu1 %v325_v56  ;;  %v312_v21 = vld [vmem:[#allocation2 + $0x20] sm:$0xff]  ;;  %v653_v23 = vld [vmem:[%s291_s19 + $0x10] sm:$0xff]  ;;  %v652_v24 = vld [vmem:[%s291_s19 + $0x8] sm:$0xff] }
  0x38   : > { %414 = vmatprep.subr.mxu0 %v319_v58  ;;  %503 = vmatprep.subr.mxu1 %v321_v59  ;;  %v651_v22 = vld [vmem:[%s291_s19] sm:$0xff]  ;;  %v654_v25 = vld [vmem:[%s291_s19 + $0x18] sm:$0xff] }
  0x39   : > { %415 = vmatpush1.msra.mxu0 %v318_v60  ;;  %504 = vmatpush1.msra.mxu1 %v320_v61 }
  0x3a   : > { %416 = vmatprep.subr.mxu0 %v314_v62  ;;  %505 = vmatprep.subr.mxu1 %v316_v63 }
  0x3b   : > { %417 = vmatpush1.msra.mxu0 %v313_v1  ;;  %506 = vmatpush1.msra.mxu1 %v315_v2 }
  0x3c   : > { %418 = vmatprep.subr.mxu0 %v309_v3  ;;  %507 = vmatprep.subr.mxu1 %v311_v4 }
  0x3d   : > { %419 = vmatpush1.msra.mxu0 %v308_v5  ;;  %508 = vmatpush1.msra.mxu1 %v310_v6 }
  0x3e   : > { %453 = vmatmul.mubr.f32.vlgmr.msra.gmra.mxu0 %v1410_v50  ;;  %542 = vmatmul.mubr.f32.vlgmr.msra.gmra.mxu1 %v1410_v50 }
  0x3f   : > { %458 = vmatprep.mubr.f32.mxu0 %v1318_v0  ;;  %547 = vmatprep.mubr.f32.mxu1 %v1318_v0 }
  0x40   : > { %1129 = vmatprep.subr.mxu0 %v387_v7  ;;  %1167 = vmatprep.subr.mxu1 %v387_v7 }
  0x41   : > { %1130 = vmatpush3.msra.mxu0 %v387_v7  ;;  %1183 = vmatpush3.msra.mxu1 %v387_v7 }
  0x42   : > { %459 = vmatmul.mubr.f32.gmra.mxu0 %v1412_v51  ;;  %548 = vmatmul.mubr.f32.gmra.mxu1 %v1412_v51 }
  0x43   : > { %1131 = vmatprep.subr.mxu0 %v382_v8  ;;  %464 = vmatprep.mubr.f32.mxu0 %v1318_v0 }
  0x44   : > { %553 = vmatprep.mubr.f32.mxu1 %v1318_v0  ;;  %1132 = vmatpush3.msra.mxu0 %v382_v8 }
  0x45   : > { %1133 = vmatprep.subr.mxu0 %v377_v9  ;;  %1168 = vmatprep.subr.mxu1 %v382_v8 }
  0x46   : > { %465 = vmatmul.mubr.f32.gmra.mxu0 %v1418_v54  ;;  %554 = vmatmul.mubr.f32.gmra.mxu1 %v1418_v54 }
  0x47   : > { %1134 = vmatpush3.msra.mxu0 %v377_v9  ;;  %470 = vmatprep.mubr.f32.mxu0 %v1318_v0 }
  0x48   : > { %1135 = vmatprep.subr.mxu0 %v372_v10  ;;  %559 = vmatprep.mubr.f32.mxu1 %v1318_v0  ;;  %v347_v0 = vld [vmem:[#allocation2 + $0x138] sm:$0xff] }
  0x49   : > { %1136 = vmatpush3.msra.mxu0 %v372_v10  ;;  %1184 = vmatpush3.msra.mxu1 %v382_v8 }
  0x4a   : > { %471 = vmatmul.mubr.f32.gmra.mxu0 %v1422_v57  ;;  %560 = vmatmul.mubr.f32.gmra.mxu1 %v1422_v57 }
  0x4b   : > { %1137 = vmatprep.subr.mxu0 %v367_v11  ;;  %1169 = vmatprep.subr.mxu1 %v377_v9 }
  0x4c   : > { %1138 = vmatpush3.msra.mxu0 %v367_v11  ;;  %1185 = vmatpush3.msra.mxu1 %v377_v9 }
  0x4d   : > { %1139 = vmatprep.subr.mxu0 %v362_v12  ;;  %1170 = vmatprep.subr.mxu1 %v372_v10 }
  0x4e   : > { %1140 = vmatpush3.msra.mxu0 %v362_v12  ;;  %1186 = vmatpush3.msra.mxu1 %v372_v10 }
  0x4f   : > { %1141 = vmatprep.subr.mxu0 %v357_v13  ;;  %1171 = vmatprep.subr.mxu1 %v367_v11 }
  0x50   : > { %1142 = vmatpush3.msra.mxu0 %v357_v13  ;;  %1187 = vmatpush3.msra.mxu1 %v367_v11 }
  0x51   : > { %1143 = vmatprep.subr.mxu0 %v352_v14  ;;  %1172 = vmatprep.subr.mxu1 %v362_v12 }
  0x52   : > { %1144 = vmatpush3.msra.mxu0 %v352_v14  ;;  %1188 = vmatpush3.msra.mxu1 %v362_v12 }
  0x53   : > { %1145 = vmatprep.subr.mxu0 %v347_v0  ;;  %1173 = vmatprep.subr.mxu1 %v357_v13 }
  0x54   : > { %1146 = vmatpush3.msra.mxu0 %v347_v0  ;;  %1189 = vmatpush3.msra.mxu1 %v357_v13 }
  0x55   : > { %1147 = vmatprep.subr.mxu0 %v342_v15  ;;  %1174 = vmatprep.subr.mxu1 %v352_v14 }
  0x56   : > { %1148 = vmatpush3.msra.mxu0 %v342_v15  ;;  %1190 = vmatpush3.msra.mxu1 %v352_v14 }
  0x57   : > { %1149 = vmatprep.subr.mxu0 %v337_v16  ;;  %1175 = vmatprep.subr.mxu1 %v347_v0 }
  0x58   : > { %1150 = vmatpush3.msra.mxu0 %v337_v16  ;;  %1191 = vmatpush3.msra.mxu1 %v347_v0 }
  0x59   : > { %1151 = vmatprep.subr.mxu0 %v332_v17  ;;  %1176 = vmatprep.subr.mxu1 %v342_v15 }
  0x5a   : > { %1152 = vmatpush3.msra.mxu0 %v332_v17  ;;  %1192 = vmatpush3.msra.mxu1 %v342_v15 }
  0x5b   : > { %1153 = vmatprep.subr.mxu0 %v327_v18  ;;  %1177 = vmatprep.subr.mxu1 %v337_v16 }
  0x5c   : > { %1154 = vmatpush3.msra.mxu0 %v327_v18  ;;  %1193 = vmatpush3.msra.mxu1 %v337_v16 }
  0x5d   : > { %1155 = vmatprep.subr.mxu0 %v322_v19  ;;  %1178 = vmatprep.subr.mxu1 %v332_v17 }
  0x5e   : > { %1156 = vmatpush3.msra.mxu0 %v322_v19  ;;  %1194 = vmatpush3.msra.mxu1 %v332_v17 }
  0x5f   : > { %1157 = vmatprep.subr.mxu0 %v317_v20  ;;  %1161 = vmatprep.mubr.f32.mxu0 %v1410_v50 }
  0x60   : > { %1158 = vmatpush3.msra.mxu0 %v317_v20  ;;  %1179 = vmatprep.subr.mxu1 %v327_v18 }
  0x61   : > { %1159 = vmatprep.subr.mxu0 %v312_v21  ;;  %1195 = vmatpush3.msra.mxu1 %v327_v18 }
  0x62   : > { %1160 = vmatpush3.msra.mxu0 %v312_v21  ;;  %1180 = vmatprep.subr.mxu1 %v322_v19 }
  0x63   : > { %1162 = vmatmul.mubr.f32.vlgmr.msra.gmra.mxu0 %v1412_v51  ;;  %1196 = vmatpush3.msra.mxu1 %v322_v19 }
  0x64   : > { %1181 = vmatprep.subr.mxu1 %v317_v20  ;;  %1164 = vmatprep.mubr.f32.mxu1 %v1418_v54 }
  0x65   : > { %1197 = vmatpush3.msra.mxu1 %v317_v20  ;;  %657 = vperm.xlu0 %1223, %v651_v22  }
  0x66   : > { %1182 = vmatprep.subr.mxu1 %v312_v21  ;;  %667 = vperm.xlu1 %1224, %v653_v23  }
  0x67   : > { %1198 = vmatpush3.msra.mxu1 %v312_v21 }
  0x68   : > { %1165 = vmatmul.mubr.f32.vlgmr.msra.gmra.mxu1 %v1422_v57 }
  0x69   : > { %662 = vperm.xlu0 %1223, %v652_v24  }
  0x6a   : > { %672 = vperm.xlu1 %1224, %v654_v25  }
  0xe0   : > { %v658_v26 = vpop.permute.xlu0 %657 }
  0xe1   : > { %v668_v44 = vpop.permute.xlu1 %667 }
  0xe4   : > { %v663_v29 = vpop.permute.xlu0 %662 }
  0xe5   : > { %v673_v4 = vpop.permute.xlu1 %672 }
  0xfe   : > { %v454_v27 = vpop.f32.mrf.mxu0  ;;  %v543_v28 = vpop.f32.mrf.mxu1 }
  0xff   : > { %v1449_v34 = vadd.f32 %v658_v26, %v454_v27  ;;  %v1451_v35 = vadd.f32 %v658_v26, %v543_v28 }
 0x100   : > { %v456_v30 = vpop.f32.mrf.mxu0  ;;  %v545_v31 = vpop.f32.mrf.mxu1 }
 0x101   : > { %v1457_v38 = vadd.f32 %v658_v26, %v456_v30  ;;  %v1459_v39 = vadd.f32 %v658_v26, %v545_v31 }
 0x102   : > { %v460_v32 = vpop.f32.mrf.mxu0  ;;  %v549_v33 = vpop.f32.mrf.mxu1 }
 0x103   : > { %v1453_v36 = vadd.f32 %v663_v29, %v460_v32  ;;  %v1455_v37 = vadd.f32 %v663_v29, %v549_v33 }
 0x104   : > { %v462_v40 = vpop.f32.mrf.mxu0  ;;  %v551_v41 = vpop.f32.mrf.mxu1 }
 0x105   : > { %v691_v42 = vmax.f32 %v1449_v34, %v1453_v36  ;;  %v705_v43 = vmax.f32 %v1451_v35, %v1455_v37  ;;  %v1465_v45 = vadd.f32 %v663_v29, %v462_v40  ;;  %v1467_v46 = vadd.f32 %v663_v29, %v551_v41 }
 0x106   : > { %v466_v47 = vpop.f32.mrf.mxu0  ;;  %v555_v48 = vpop.f32.mrf.mxu1 }
 0x107   : > { %v692_v49 = vrot.slane %v691_v42, 4  ;;  %v706_v50 = vrot.slane %v705_v43, 4  ;;  %v698_v51 = vmax.f32 %v1457_v38, %v1465_v45  ;;  %v712_v52 = vmax.f32 %v1459_v39, %v1467_v46 }
 0x108   : > { %v468_v53 = vpop.f32.mrf.mxu0  ;;  %v557_v54 = vpop.f32.mrf.mxu1  ;;  %v1473_v59 = vadd.f32 %v668_v44, %v466_v47  ;;  %v1475_v60 = vadd.f32 %v668_v44, %v555_v48 }
 0x109   : > { %v693_v55 = vmax.f32 %v691_v42, %v692_v49  ;;  %v707_v56 = vmax.f32 %v705_v43, %v706_v50  ;;  %v699_v57 = vrot.slane %v698_v51, 4  ;;  %v713_v58 = vrot.slane %v712_v52, 4 }
 0x10a   : > { %v472_v61 = vpop.f32.mrf.mxu0  ;;  %v561_v62 = vpop.f32.mrf.mxu1  ;;  %v1477_v5 = vadd.f32 %v668_v44, %v468_v53  ;;  %v1479_v6 = vadd.f32 %v668_v44, %v557_v54 }
 0x10b   : > { %v694_v63 = vrot.slane %v693_v55, 2  ;;  %v708_v1 = vrot.slane %v707_v56, 2  ;;  %v700_v2 = vmax.f32 %v698_v51, %v699_v57  ;;  %v714_v3 = vmax.f32 %v712_v52, %v713_v58 }
 0x10c   : > { %v1481_v7 = vadd.f32 %v673_v4, %v472_v61  ;;  %v1483_v8 = vadd.f32 %v673_v4, %v561_v62  ;;  %v474_v9 = vpop.f32.mrf.mxu0  ;;  %v563_v10 = vpop.f32.mrf.mxu1 }
 0x10d   : > { %v695_v11 = vmax.f32 %v693_v55, %v694_v63  ;;  %v709_v12 = vmax.f32 %v707_v56, %v708_v1  ;;  %v701_v13 = vrot.slane %v700_v2, 2  ;;  %v715_v14 = vrot.slane %v714_v3, 2 }
 0x10e   : > { %v719_v0 = vmax.f32 %v1473_v59, %v1481_v7  ;;  %v733_v15 = vmax.f32 %v1475_v60, %v1483_v8  ;;  %v1489_v16 = vadd.f32 %v673_v4, %v474_v9  ;;  %v1491_v17 = vadd.f32 %v673_v4, %v563_v10 }
 0x10f   : > { %v696_v18 = vrot.slane %v695_v11, 1  ;;  %v710_v19 = vrot.slane %v709_v12, 1  ;;  %v702_v20 = vmax.f32 %v700_v2, %v701_v13  ;;  %v716_v21 = vmax.f32 %v714_v3, %v715_v14 }
 0x110   : > { %v720_v22 = vrot.slane %v719_v0, 4  ;;  %v734_v23 = vrot.slane %v733_v15, 4  ;;  %v726_v24 = vmax.f32 %v1477_v5, %v1489_v16  ;;  %v740_v25 = vmax.f32 %v1479_v6, %v1491_v17 }
 0x111   : > { %v697_v26 = vmax.f32 %v695_v11, %v696_v18  ;;  %v711_v27 = vmax.f32 %v709_v12, %v710_v19  ;;  %v703_v28 = vrot.slane %v702_v20, 1  ;;  %v717_v29 = vrot.slane %v716_v21, 1 }
 0x112   : > { %v721_v30 = vmax.f32 %v719_v0, %v720_v22  ;;  %v735_v31 = vmax.f32 %v733_v15, %v734_v23  ;;  %v727_v32 = vrot.slane %v726_v24, 4  ;;  %v741_v33 = vrot.slane %v740_v25, 4 }
 0x113   : > { %v747_v40 = vsub.f32 %v1449_v34, %v697_v26  ;;  %v751_v41 = vsub.f32 %v1453_v36, %v697_v26  ;;  %v749_v42 = vsub.f32 %v1451_v35, %v711_v27  ;;  %v753_v43 = vsub.f32 %v1455_v37, %v711_v27 }
 0x114   : > { %v704_v44 = vmax.f32 %v702_v20, %v703_v28  ;;  %v718_v47 = vmax.f32 %v716_v21, %v717_v29  ;;  %v722_v48 = vrot.slane %v721_v30, 2  ;;  %v736_v49 = vrot.slane %v735_v31, 2 }
 0x115   : > { %v763_v50 = vmul.f32 1.442695, %v747_v40  ;;  %v771_v51 = vmul.f32 1.442695, %v751_v41  ;;  %v767_v52 = vmul.f32 1.442695, %v749_v42  ;;  %v728_v53 = vmax.f32 %v726_v24, %v727_v32 }
 0x116   : > { %v775_v54 = vmul.f32 1.442695, %v753_v43  ;;  %v748_v55 = vsub.f32 %v1457_v38, %v704_v44  ;;  %v752_v56 = vsub.f32 %v1465_v45, %v704_v44  ;;  %v750_v34 = vsub.f32 %v1459_v39, %v718_v47 }
 0x117   : > { %1225 = vpow2.f32 %v763_v50  ;;  %v754_v35 = vsub.f32 %v1467_v46, %v718_v47  ;;  %v723_v36 = vmax.f32 %v721_v30, %v722_v48  ;;  %v737_v37 = vmax.f32 %v735_v31, %v736_v49 }
 0x118   : > { %1227 = vpow2.f32 %v771_v51  ;;  %v765_v57 = vmul.f32 1.442695, %v748_v55  ;;  %v773_v58 = vmul.f32 1.442695, %v752_v56  ;;  %v769_v61 = vmul.f32 1.442695, %v750_v34 }
 0x119   : > { %1229 = vpow2.f32 %v767_v52  ;;  %v724_v62 = vrot.slane %v723_v36, 1  ;;  %v738_v63 = vrot.slane %v737_v37, 1  ;;  %v777_v1 = vmul.f32 1.442695, %v754_v35 }
 0x11a   : > { %1231 = vpow2.f32 %v775_v54  ;;  %v729_v2 = vrot.slane %v728_v53, 2  ;;  %v742_v38 = vmax.f32 %v740_v25, %v741_v33 }
 0x11b   : > { %1233 = vpow2.f32 %v765_v57  ;;  %v725_v45 = vmax.f32 %v723_v36, %v724_v62  ;;  %v739_v3 = vmax.f32 %v737_v37, %v738_v63 }
 0x11c   : > { %1235 = vpow2.f32 %v773_v58  ;;  %v730_v39 = vmax.f32 %v728_v53, %v729_v2  ;;  %v743_v4 = vrot.slane %v742_v38, 2 }
 0x11d   : > { %1237 = vpow2.f32 %v769_v61  ;;  %v755_v46 = vsub.f32 %v1473_v59, %v725_v45  ;;  %v759_v9 = vsub.f32 %v1481_v7, %v725_v45  ;;  %v757_v10 = vsub.f32 %v1475_v60, %v739_v3 }
 0x11e   : > { %1239 = vpow2.f32 %v777_v1  ;;  %v761_v11 = vsub.f32 %v1483_v8, %v739_v3  ;;  %v731_v12 = vrot.slane %v730_v39, 1  ;;  %v744_v13 = vmax.f32 %v742_v38, %v743_v4 }
 0x11f   : > { %v779_v14 = vmul.f32 1.442695, %v755_v46  ;;  %v787_v0 = vmul.f32 1.442695, %v759_v9  ;;  %v783_v15 = vmul.f32 1.442695, %v757_v10 }
 0x120   : > { %v791_v18 = vmul.f32 1.442695, %v761_v11  ;;  %v732_v19 = vmax.f32 %v730_v39, %v731_v12  ;;  %v745_v20 = vrot.slane %v744_v13, 1 }
 0x121   : > { %1241 = vpow2.f32 %v779_v14 }
 0x122   : > { %1243 = vpow2.f32 %v787_v0  ;;  %v756_v21 = vsub.f32 %v1477_v5, %v732_v19  ;;  %v760_v59 = vsub.f32 %v1489_v16, %v732_v19  ;;  %v746_v7 = vmax.f32 %v744_v13, %v745_v20 }
 0x123   : > { %1245 = vpow2.f32 %v783_v15  ;;  %v1163_v60 = vpop.f32.mrf.mxu0 }
 0x124   : > { %v1226_v22 = vpop.eup %1225  ;;  %1247 = vpow2.f32 %v791_v18  ;;  %v781_v8 = vmul.f32 1.442695, %v756_v21  ;;  %v789_v23 = vmul.f32 1.442695, %v760_v59  ;;  %v758_v24 = vsub.f32 %v1479_v6, %v746_v7 }
 0x125   : > { %v1228_v25 = vpop.eup %1227  ;;  %v762_v26 = vsub.f32 %v1491_v17, %v746_v7  ;;  %v632_v27 = vpop.f32.mrf.mxu0 }
 0x126   : > { %v1230_v28 = vpop.eup %1229  ;;  %v795_v29 = vadd.f32 %v1228_v25, %v1226_v22  ;;  %1249 = vpow2.f32 %v781_v8  ;;  %v785_v30 = vmul.f32 1.442695, %v758_v24  ;;  %v855_v5 = vmul.f32 %v1228_v25, %v1163_v60 }
 0x127   : > { %v1232_v31 = vpop.eup %1231  ;;  %1251 = vpow2.f32 %v789_v23  ;;  %v793_v16 = vmul.f32 1.442695, %v762_v26  ;;  %v851_v32 = vmul.f32 %v1226_v22, %v632_v27  ;;  %v853_v42 = vmul.f32 %v1230_v28, %v632_v27 }
 0x128   : > { %v1234_v33 = vpop.eup %1233  ;;  %v796_v40 = vrot.slane %v795_v29, 4  ;;  %v809_v41 = vadd.f32 %v1232_v31, %v1230_v28  ;;  %1253 = vpow2.f32 %v785_v30  ;;  %v857_v6 = vmul.f32 %v1232_v31, %v1163_v60 }
 0x129   : > { %v1236_v43 = vpop.eup %1235  ;;  %1255 = vpow2.f32 %v793_v16  ;;  %v852_v44 = vmul.f32 %v1234_v33, %v632_v27  ;;  %v867_v17 = vadd.f32 %v855_v5, %v851_v32  ;;  %v1166_v32 = vpop.f32.mrf.mxu1 }
 0x12a   : > { %v1238_v47 = vpop.eup %1237  ;;  %v797_v48 = vadd.f32 %v796_v40, %v795_v29  ;;  %v810_v49 = vrot.slane %v809_v41, 4  ;;  %v802_v50 = vadd.f32 %v1236_v43, %v1234_v33  ;;  %v856_v51 = vmul.f32 %v1236_v43, %v1163_v60 }
 0x12b   : > { %v1240_v52 = vpop.eup %1239  ;;  %v868_v34 = vrot.slane %v867_v17, 4  ;;  %v881_v36 = vadd.f32 %v857_v6, %v853_v42  ;;  %v854_v10 = vmul.f32 %v1238_v47, %v632_v27 }
 0x12c   : > { %v798_v53 = vrot.slane %v797_v48, 2  ;;  %v811_v54 = vadd.f32 %v810_v49, %v809_v41  ;;  %v803_v55 = vrot.slane %v802_v50, 4  ;;  %v816_v56 = vadd.f32 %v1240_v52, %v1238_v47 }
 0x12d   : > { %v874_v35 = vadd.f32 %v856_v51, %v852_v44  ;;  %v858_v9 = vmul.f32 %v1240_v52, %v1163_v60  ;;  %v869_v11 = vadd.f32 %v868_v34, %v867_v17  ;;  %v882_v0 = vrot.slane %v881_v36, 4  ;;  %v642_v52 = vpop.f32.mrf.mxu1 }
 0x12e   : > { %v1513_v37 = vpop.eup %1241  ;;  %v799_v57 = vadd.f32 %v798_v53, %v797_v48  ;;  %v812_v58 = vrot.slane %v811_v54, 2  ;;  %v804_v61 = vadd.f32 %v803_v55, %v802_v50  ;;  %v817_v62 = vrot.slane %v816_v56, 4 }
 0x12f   : > { %v1244_v63 = vpop.eup %1243  ;;  %v875_v1 = vrot.slane %v874_v35, 4  ;;  %v870_v60 = vrot.slane %v869_v11, 2  ;;  %v1519_v28 = vadd.f32 %v882_v0, %v881_v36  ;;  %v888_v29 = vadd.f32 %v858_v9, %v854_v10 }
 0x130   : > { %v1515_v2 = vpop.eup %1245  ;;  %v800_v38 = vrot.slane %v799_v57, 1  ;;  %v813_v45 = vadd.f32 %v812_v58, %v811_v54  ;;  %v805_v3 = vrot.slane %v804_v61, 2  ;;  %v818_v39 = vadd.f32 %v817_v62, %v816_v56 }
 0x131   : > { %v1248_v4 = vpop.eup %1247  ;;  %v823_v46 = vadd.f32 %v1244_v63, %v1513_v37  ;;  %v876_v22 = vadd.f32 %v875_v1, %v874_v35  ;;  %v871_v44 = vadd.f32 %v870_v60, %v869_v11  ;;  %v884_v17 = vrot.slane %v1519_v28, 2 }
 0x132   : > { %v801_v12 = vadd.f32 %v800_v38, %v799_v57  ;;  %v814_v13 = vrot.slane %v813_v45, 1  ;;  %v806_v14 = vadd.f32 %v805_v3, %v804_v61  ;;  %v837_v19 = vadd.f32 %v1248_v4, %v1515_v2 }
 0x133   : > { %v1250_v15 = vpop.eup %1249  ;;  %v824_v18 = vrot.slane %v823_v46, 4  ;;  %v819_v7 = vrot.slane %v818_v39, 2  ;;  %v877_v40 = vrot.slane %v876_v22, 2  ;;  %v889_v47 = vrot.slane %v888_v29, 4 }
 0x134   : > { %v1252_v20 = vpop.eup %1251  ;;  %v815_v21 = vadd.f32 %v814_v13, %v813_v45  ;;  %v807_v59 = vrot.slane %v806_v14, 1  ;;  %v838_v24 = vrot.slane %v837_v19, 4  ;;  %1257 = vrcp.f32 %v801_v12 }
 0x135   : > { %v1254_v8 = vpop.eup %1253  ;;  %v825_v23 = vadd.f32 %v824_v18, %v823_v46  ;;  %v830_v25 = vadd.f32 %v1252_v20, %v1250_v15  ;;  %v820_v33 = vadd.f32 %v819_v7, %v818_v39  ;;  %v878_v54 = vadd.f32 %v877_v40, %v876_v22 }
 0x136   : > { %v1256_v26 = vpop.eup %1255  ;;  %v808_v27 = vadd.f32 %v807_v59, %v806_v14  ;;  %v839_v5 = vadd.f32 %v838_v24, %v837_v19  ;;  %1259 = vrcp.f32 %v815_v21  ;;  %v863_v55 = vmul.f32 %v1244_v63, %v1166_v32 }
 0x137   : > { %v826_v30 = vrot.slane %v825_v23, 2  ;;  %v831_v31 = vrot.slane %v830_v25, 4  ;;  %v844_v16 = vadd.f32 %v1256_v26, %v1254_v8  ;;  %v821_v53 = vrot.slane %v820_v33, 1 }
 0x138   : > { %v840_v42 = vrot.slane %v839_v5, 2  ;;  %1261 = vrcp.f32 %v808_v27  ;;  %v864_v56 = vmul.f32 %v1252_v20, %v1166_v32  ;;  %v865_v58 = vmul.f32 %v1248_v4, %v1166_v32 }
 0x139   : > { %v827_v41 = vadd.f32 %v826_v30, %v825_v23  ;;  %v832_v43 = vadd.f32 %v831_v31, %v830_v25  ;;  %v845_v6 = vrot.slane %v844_v16, 4  ;;  %v866_v61 = vmul.f32 %v1256_v26, %v1166_v32 }
 0x13a   : > { %v841_v49 = vadd.f32 %v840_v42, %v839_v5  ;;  %v859_v62 = vmul.f32 %v1513_v37, %v642_v52  ;;  %v860_v1 = vmul.f32 %v1250_v15, %v642_v52  ;;  %v890_v39 = vadd.f32 %v889_v47, %v888_v29 }
 0x13b   : > { %v828_v48 = vrot.slane %v827_v41, 1  ;;  %v833_v50 = vrot.slane %v832_v43, 2  ;;  %v846_v51 = vadd.f32 %v845_v6, %v844_v16  ;;  %v861_v46 = vmul.f32 %v1515_v2, %v642_v52 }
 0x13c   : > { %v842_v35 = vrot.slane %v841_v49, 1  ;;  %v862_v9 = vmul.f32 %v1254_v8, %v642_v52  ;;  %v895_v10 = vadd.f32 %v863_v55, %v859_v62  ;;  %v902_v12 = vadd.f32 %v864_v56, %v860_v1 }
 0x13d   : > { %v829_v34 = vadd.f32 %v828_v48, %v827_v41  ;;  %v834_v36 = vadd.f32 %v833_v50, %v832_v43  ;;  %v847_v57 = vrot.slane %v846_v51, 2  ;;  %v909_v14 = vadd.f32 %v865_v58, %v861_v46 }
 0x13e   : > { %v843_v38 = vadd.f32 %v842_v35, %v841_v49  ;;  %v896_v13 = vrot.slane %v895_v10, 4  ;;  %v916_v4 = vadd.f32 %v866_v61, %v862_v9  ;;  %v822_v0 = vadd.f32 %v821_v53, %v820_v33 }
 0x13f   : > { %v835_v45 = vrot.slane %v834_v36, 1  ;;  %v848_v3 = vadd.f32 %v847_v57, %v846_v51  ;;  %1263 = vrcp.f32 %v829_v34  ;;  %v872_v37 = vrot.slane %v871_v44, 1 }
 0x140   : > { %1265 = vrcp.f32 %v843_v38  ;;  %v903_v15 = vrot.slane %v902_v12, 4  ;;  %v879_v19 = vrot.slane %v878_v54, 1  ;;  %v897_v20 = vadd.f32 %v896_v13, %v895_v10  ;;  %v1102_v38 = vld [vmem:[%s1550_s3] ss:$0 sm:$0xff] }
 0x141   : > { %v836_v63 = vadd.f32 %v835_v45, %v834_v36  ;;  %v849_v11 = vrot.slane %v848_v3, 1  ;;  %v1258_v18 = vpop.eup %1257  ;;  %v910_v21 = vrot.slane %v909_v14, 4  ;;  %v917_v59 = vrot.slane %v916_v4, 4 }
 0x142   : > { %v891_v2 = vrot.slane %v890_v39, 2  ;;  %v904_v22 = vadd.f32 %v903_v15, %v902_v12  ;;  %v885_v23 = vadd.f32 %v884_v17, %v1519_v28  ;;  %v898_v24 = vrot.slane %v897_v20, 2 }
 0x143   : > { %1267 = vrcp.f32 %v836_v63  ;;  %v1260_v7 = vpop.eup %1259  ;;  %v850_v8 = vadd.f32 %v849_v11, %v848_v3  ;;  %v911_v25 = vadd.f32 %v910_v21, %v909_v14  ;;  %v918_v60 = vadd.f32 %v917_v59, %v916_v4 }
 0x144   : > { %1269 = vrcp.f32 %v822_v0  ;;  %v905_v27 = vrot.slane %v904_v22, 2  ;;  %v899_v29 = vadd.f32 %v898_v24, %v897_v20  ;;  %v880_v31 = vadd.f32 %v879_v19, %v878_v54 }
 0x145   : > { %v1262_v26 = vpop.eup %1261  ;;  %1271 = vrcp.f32 %v850_v8  ;;  %v912_v30 = vrot.slane %v911_v25, 2  ;;  %v919_v5 = vrot.slane %v918_v60, 2  ;;  %v892_v16 = vadd.f32 %v891_v2, %v890_v39 }
 0x146   : > { %v906_v32 = vadd.f32 %v905_v27, %v904_v22  ;;  %v873_v33 = vadd.f32 %v872_v37, %v871_v44  ;;  %v886_v40 = vrot.slane %v885_v23, 1  ;;  %v900_v42 = vrot.slane %v899_v29, 1 }
 0x147   : > { %v913_v41 = vadd.f32 %v912_v30, %v911_v25  ;;  %v920_v6 = vadd.f32 %v919_v5, %v918_v60  ;;  %v926_v47 = vmul.f32 %v1262_v26, %v880_v31  ;;  %v893_v48 = vrot.slane %v892_v16, 1  ;;  %v1103_v26 = vld [vmem:[%s1551_s4] ss:$0 sm:$0xff] }
 0x148   : > { %v907_v43 = vrot.slane %v906_v32, 1  ;;  %v924_v49 = vmul.f32 %v1258_v18, %v873_v33  ;;  %v887_v51 = vadd.f32 %v886_v40, %v885_v23  ;;  %v901_v52 = vadd.f32 %v900_v42, %v899_v29  ;;  %v1104_v29 = vld [vmem:[%s1552_s5] ss:$0 sm:$0xff] }
 0x149   : > { %v914_v28 = vrot.slane %v913_v41, 1  ;;  %v921_v54 = vrot.slane %v920_v6, 1  ;;  %v894_v35 = vadd.f32 %v893_v48, %v892_v16 }
 0x14a   : > { %v908_v53 = vadd.f32 %v907_v43, %v906_v32  ;;  %v940_v55 = vsel %vm939_vm0, %v924_v49, %v926_v47  ;;  %v928_v34 = vmul.f32 %v1260_v7, %v887_v51 }
 0x14b   : > { %v915_v56 = vadd.f32 %v914_v28, %v913_v41  ;;  %v922_v45 = vadd.f32 %v921_v54, %v920_v6 }
 0x14c   : > { %v1264_v17 = vpop.eup %1263  ;;  %v943_v61 = vsel %vm942_vm1, %v940_v55, %v928_v34 }
 0x14d   : > { %v1266_v50 = vpop.eup %1265  ;;  %v932_v36 = vmul.f32 %v1264_v17, %v901_v52 }
 0x14e   : > { %v936_v62 = vmul.f32 %v1266_v50, %v915_v56 }
 0x150   : > { %v1268_v44 = vpop.eup %1267 }
 0x151   : > { %v934_v57 = vmul.f32 %v1268_v44, %v908_v53  ;;  %v1270_v58 = vpop.eup %1269 }
 0x152   : > { %v930_v1 = vmul.f32 %v1270_v58, %v894_v35  ;;  %v1272_v39 = vpop.eup %1271 }
 0x153   : > { %v941_v3 = vsel %vm939_vm0, %v932_v36, %v934_v57  ;;  %v938_v10 = vmul.f32 %v1272_v39, %v922_v45 }
 0x154   : > { %v944_v46 = vsel %vm942_vm1, %v941_v3, %v936_v62  ;;  %v946_v9 = vsel %vm945_vm2, %v943_v61, %v930_v1 }
 0x155   : > { %v955_v63 = vadd.f32 %v1102_v38, %v946_v9  ;;  %v947_v11 = vsel %vm945_vm2, %v944_v46, %v938_v10 }
 0x156   : > { %v956_v13 = vadd.f32 %v1102_v38, %v947_v11 }
 0x157   : > { %v958_v12 = vsel %vm957_vm3, %v955_v63, 0.0 }
 0x158   : > { %959 = vadd.xlane.f32.xlu0 %v958_v12  ;;  %v961_v14 = vsel %vm957_vm3, %v956_v13, 0.0 }
 0x159   : > { %962 = vadd.xlane.f32.xlu1 %v961_v14 }
 0x1e1   : > { %v960_v4 = vpop.xlane.xlu0 %959 }
 0x1e2   : > { %v965_v0 = vmul.f32 0.0078125, %v960_v4  ;;  %v963_v18 = vpop.xlane.xlu1 %962 }
 0x1e3   : > { %v966_v15 = vmul.f32 0.0078125, %v963_v18 }
 0x1e4   : > { %v967_v37 = vsub.f32 %v955_v63, %v965_v0 }
 0x1e5   : > { %v968_v19 = vsub.f32 %v956_v13, %v966_v15 }
 0x1e6   : > { %v969_v20 = vmul.f32 %v967_v37, %v967_v37 }
 0x1e7   : > { %v970_v59 = vmul.f32 %v968_v19, %v968_v19 }
 0x1e8   : > { %v971_v21 = vsel %vm957_vm3, %v969_v20, 0.0 }
 0x1e9   : > { %972 = vadd.xlane.f32.xlu0 %v971_v21  ;;  %v974_v7 = vsel %vm957_vm3, %v970_v59, 0.0 }
 0x1ed   : > { %975 = vadd.xlane.f32.xlu0 %v974_v7 }
 0x272   : > { %v973_v2 = vpop.xlane.xlu0 %972 }
 0x273   : > { %v977_v22 = vmul.f32 0.0078125, %v973_v2 }
 0x275   : > { %v979_v8 = vadd.f32 1e-12, %v977_v22 }
 0x276   : > { %v976_v23 = vpop.xlane.xlu0 %975 }
 0x277   : > { %1273 = vrsqrt.f32 %v979_v8  ;;  %v978_v24 = vmul.f32 0.0078125, %v976_v23 }
 0x279   : > { %v980_v25 = vadd.f32 1e-12, %v978_v24 }
 0x27b   : > { %1275 = vrsqrt.f32 %v980_v25 }
 0x284   : > { %v1274_v60 = vpop.eup %1273 }
 0x285   : > { %v983_v27 = vmul.f32 %v1274_v60, %v967_v37 }
 0x287   : > { %v992_v30 = vmul.f32 %v1103_v26, %v983_v27 }
 0x288   : > { %v1276_v5 = vpop.eup %1275 }
 0x289   : > { %v1001_v31 = vadd.f32 %v1104_v29, %v992_v30  ;;  %v984_v16 = vmul.f32 %v1276_v5, %v968_v19 }
 0x28b   : > { %1003 = vst [vmem:[%s1408_s16 + $0x10] sm:$0xf] %v1001_v31  ;;  %v993_v32 = vmul.f32 %v1103_v26, %v984_v16 }
 0x28d   : > { %v1002_v33 = vadd.f32 %v1104_v29, %v993_v32 }
 0x28f   : > { %1004 = vst [vmem:[%s1408_s16 + $0x28] sm:$0xf] %v1002_v33 }
 0x290 PF: > { %s17_s21 = sadd.s32 1, %s1313_s21  }
 0x291   : > { %p14_p1 = scmp.ge.s32.totalorder %s17_s21, 4  }
 0x293   :  { %16 = sbr.rel (!%p14_p1) target bundleno = 1 (0x1), region = 82 }
 0x298   :  { %1029 = vsyncpa [#allocation3], 1 }
 0x299   :  { %1031 = vsyncpa [#allocation3 + $0x1], 1 }

</bundles_post_ra>
